<compile_context>
chip_gen: v7x
topology: tpu7x:2x2x1
jax: 0.10.0
libtpu: 0.0.40
codegen_flags: <defaults>
</compile_context>

<pallas_src>
import math
import functools

import jax
import jax.numpy as jnp
from jax.experimental import pallas as pl
from jax.experimental.pallas import tpu as pltpu


# ---------------------------------------------------------------------------
# small helpers
# ---------------------------------------------------------------------------
def _cdiv(a: int, b: int) -> int:
    return -(-a // b)


def _round_up(x: int, m: int) -> int:
    return ((x + m - 1) // m) * m


def make_divisible_by(x: int, d: int) -> int:
    # mirrors utils.make_divisible_by: round up to a multiple of d
    return _round_up(x, d)


def _vmem_capacity_bytes() -> int:
    """Per-TensorCore VMEM capacity; conservative 64 MiB fallback (fits v7x)."""
    try:
        info = pltpu.get_tpu_info()
        cap = getattr(info, "vmem_capacity_bytes", None)
        if cap:
            return int(cap)
    except Exception:
        pass
    return 64 * 1024 * 1024


def _pick_divisor_tile(dim: int, target: int) -> int:
    """Largest multiple of 128 that divides `dim` and is <= target (>= 128)."""
    t = min(target, dim)
    t = max(128, (t // 128) * 128)
    while dim % t != 0 and t > 128:
        t -= 128
    return t


# ---------------------------------------------------------------------------
# Pallas kernel: tiled matmul, f32 accumulation, optional bias in epilogue.
# ---------------------------------------------------------------------------
def _linear_kernel(x_ref, w_ref, *refs, use_bias, multi_k, acc_in_out):
    idx = 0
    b_ref = None
    if use_bias:
        b_ref = refs[idx]
        idx += 1
    o_ref = refs[idx]
    idx += 1

    if not multi_k:
        # Whole reduction in one shot: no accumulator, no init/epilogue.
        acc = jnp.dot(x_ref[...], w_ref[...], preferred_element_type=jnp.float32)
        if use_bias:
            acc = acc + b_ref[...].astype(jnp.float32)
        o_ref[...] = acc.astype(o_ref.dtype)
        return

    # K is split across the innermost ("arbitrary") grid axis.
    acc_ref = o_ref if acc_in_out else refs[idx]
    k = pl.program_id(2)

    @pl.when(k == 0)
    def _():
        acc_ref[...] = jnp.zeros_like(acc_ref)

    acc_ref[...] += jnp.dot(x_ref[...], w_ref[...], preferred_element_type=jnp.float32)

    if use_bias or not acc_in_out:
        @pl.when(k == pl.num_programs(2) - 1)
        def _():
            acc = acc_ref[...].astype(jnp.float32)
            if use_bias:
                acc = acc + b_ref[...].astype(jnp.float32)
            o_ref[...] = acc.astype(o_ref.dtype)


# ---------------------------------------------------------------------------
# Tile selection: big tiles under a generation-aware VMEM budget.
# ---------------------------------------------------------------------------
def _select_tiles(M, K, N, compute_itemsize, out_itemsize, *,
                  sublane_mult, vmem_budget, needs_acc_scratch,
                  tn_target=512, tk_max=None):
    # tn: multiple of 128 (N asserted %128==0); partial edge j-blocks allowed.
    tn = min(tn_target, N)

    # tm: large when M is large; otherwise one dtype-aligned (partial) block.
    tm_target = 512 if M >= 512 else 256
    if M >= tm_target:
        tm = tm_target
    else:
        tm = _round_up(max(M, 1), sublane_mult)

    # tk must divide K exactly (reduction axis). Prefer tk = K (drops k axis).
    tk_cap = tk_max if tk_max is not None else K
    tk = _pick_divisor_tile(K, min(tk_cap, K))

    def vmem_bytes(tm_, tn_, tk_):
        acc = tm_ * tn_ * 4 if (K // tk_ > 1 and needs_acc_scratch) else 0
        return (2 * (tm_ * tk_ + tk_ * tn_) * compute_itemsize   # dbl-buffered in
                + 2 * tm_ * tn_ * out_itemsize                   # dbl-buffered out
                + acc
                + 2 * tn_ * 4)                                   # bias tile

    # Shrink to fit the per-TensorCore budget: tk first, then tn, then tm.
    while vmem_bytes(tm, tn, tk) > vmem_budget:
        if tk > 128:
            tk = _pick_divisor_tile(K, max(128, tk // 2))
        elif tn > 128:
            tn = max(128, ((tn // 2) // 128) * 128)
        elif tm > sublane_mult:
            tm = max(sublane_mult, ((tm // 2) // sublane_mult) * sublane_mult)
        else:
            break

    # Megacore friendliness (v7x two TCs): if there is only a single (i, j)
    # block, prefer splitting M (keeps weight reuse); only halve tn if it stays
    # >= 256 so MXU occupancy on v6e/v7x is not hurt. Otherwise accept 1 block.
    gm, gn = _cdiv(M, tm), _cdiv(N, tn)
    if gm * gn < 2:
        half_m = _round_up(_cdiv(M, 2), sublane_mult)
        if half_m < tm and M > sublane_mult:
            tm = half_m
        elif tn >= 512:
            tn //= 2

    return tm, tn, tk


# ---------------------------------------------------------------------------
# Wrapper: builds specs / grid and calls pallas_call. No host pad / slice.
# ---------------------------------------------------------------------------
def linear_projection_matmul(x2d, w_t, bias=None, *,
                             compute_dtype=jnp.bfloat16, tk_max=None):
    """x2d: (M, K), w_t: (K, N), bias: (N,) or None -> (M, N) in x2d.dtype."""
    M, K = x2d.shape
    K2, N = w_t.shape
    assert K == K2
    assert K % 128 == 0 and N % 128 == 0, "in/out dims must be multiples of 128"
    use_bias = bias is not None
    out_dtype = x2d.dtype

    # Low-precision MXU path (default bf16); f32 accumulation is kept in-kernel.
    if compute_dtype is not None:
        x2d = x2d.astype(compute_dtype)
        w_t = w_t.astype(compute_dtype)

    compute_itemsize = jnp.dtype(x2d.dtype).itemsize
    out_itemsize = jnp.dtype(out_dtype).itemsize
    sublane_mult = max(8, 32 // compute_itemsize)   # 8 f32, 16 bf16, 32 int8/fp8

    capacity = _vmem_capacity_bytes()
    vmem_budget = int(capacity * 0.6)
    needs_acc_scratch = (out_dtype != jnp.float32)

    tm, tn, tk = _select_tiles(
        M, K, N, compute_itemsize, out_itemsize,
        sublane_mult=sublane_mult, vmem_budget=vmem_budget,
        needs_acc_scratch=needs_acc_scratch, tk_max=tk_max)

    gm, gn, gk = _cdiv(M, tm), _cdiv(N, tn), K // tk
    multi_k = gk > 1
    acc_in_out = multi_k and (out_dtype == jnp.float32)

    if multi_k:
        x_spec = pl.BlockSpec((tm, tk), lambda i, j, k: (i, k))
        w_spec = pl.BlockSpec((tk, tn), lambda i, j, k: (k, j))
        b_spec = pl.BlockSpec((1, tn), lambda i, j, k: (0, j))
        o_spec = pl.BlockSpec((tm, tn), lambda i, j, k: (i, j))
        grid = (gm, gn, gk)
        dims = ("parallel", "parallel", "arbitrary")
    else:
        x_spec = pl.BlockSpec((tm, tk), lambda i, j: (i, 0))
        w_spec = pl.BlockSpec((tk, tn), lambda i, j: (0, j))
        b_spec = pl.BlockSpec((1, tn), lambda i, j: (0, j))
        o_spec = pl.BlockSpec((tm, tn), lambda i, j: (i, j))
        grid = (gm, gn)
        dims = ("parallel", "parallel")

    in_specs = [x_spec, w_spec]
    operands = [x2d, w_t]
    if use_bias:
        in_specs.append(b_spec)
        operands.append(bias.reshape(1, N).astype(jnp.float32))

    scratch_shapes = []
    if multi_k and not acc_in_out:
        scratch_shapes.append(pltpu.VMEM((tm, tn), jnp.float32))

    vmem_use = (2 * (tm * tk + tk * tn) * compute_itemsize
                + 2 * tm * tn * out_itemsize
                + (tm * tn * 4 if (multi_k and not acc_in_out) else 0)
                + (2 * tn * 4 if use_bias else 0))
    vmem_limit = int(min(capacity, max(vmem_use + (16 << 20), 32 << 20)))

    # Cost estimate with actual re-read traffic (x streamed gn times, W gm times).
    cost = pl.CostEstimate(
        flops=2 * M * N * K,
        transcendentals=0,
        bytes_accessed=(M * K * compute_itemsize * gn
                        + K * N * compute_itemsize * gm
                        + M * N * out_itemsize
                        + (N * 4 * gm if use_bias else 0)),
    )

    return pl.pallas_call(
        functools.partial(_linear_kernel, use_bias=use_bias,
                          multi_k=multi_k, acc_in_out=acc_in_out),
        out_shape=jax.ShapeDtypeStruct((M, N), out_dtype),
        grid_spec=pltpu.PrefetchScalarGridSpec(
            num_scalar_prefetch=0,
            grid=grid,
            in_specs=in_specs,
            out_specs=o_spec,
            scratch_shapes=scratch_shapes,
        ),
        compiler_params=pltpu.CompilerParams(
            dimension_semantics=dims,
            vmem_limit_bytes=vmem_limit,
        ),
        cost_estimate=cost,
    )(*operands)


# ---------------------------------------------------------------------------
# LinearProjection module equivalent (init + forward)
# ---------------------------------------------------------------------------
class LinearProjection:
    def __init__(self, in_dim=None, out_dim=None, **kwargs):
        if in_dim is None:
            in_dim = kwargs["hidden_size"]
        if out_dim is None:
            out_dim = kwargs.get("out_dim", in_dim)
        if kwargs.get("is_vocab_head", False):
            out_dim = kwargs.get("vocab_size", 32000)

        in_dim = make_divisible_by(in_dim, 128)
        out_dim = make_divisible_by(out_dim, 128)
        self.in_dim = in_dim
        self.out_dim = out_dim
        self.use_bias = kwargs.get("projection_layers_use_bias", False)
        param_dtype = kwargs.get("dtype", jnp.float32)
        # bf16 MXU compute by default (f32 accumulation in-kernel).
        # Opt out with compute_dtype=jnp.float32 (or None to use param dtype).
        self.compute_dtype = kwargs.get("compute_dtype", jnp.bfloat16)
        self._tk_max = kwargs.get("tk_max", None)   # testing / tuning hook

        key = kwargs.get("key", jax.random.PRNGKey(0))
        wk, bk = jax.random.split(key)

        # trunc_normal_(weight, mean=0, std=1/sqrt(out_dim), a=-2std, b=2std)
        fan_in = out_dim
        std = 1.0 / math.sqrt(fan_in)
        w = jax.random.truncated_normal(
            wk, lower=-2.0, upper=2.0, shape=(out_dim, in_dim), dtype=jnp.float32
        ) * std
        w = w.astype(param_dtype)
        # Store pre-transposed (in_dim, out_dim) directly in the compute dtype
        # so there is no per-call weight cast / HBM copy.
        store_dtype = self.compute_dtype if self.compute_dtype is not None else param_dtype
        self.w_t = jnp.asarray(w.T, dtype=store_dtype)

        if self.use_bias:
            # nn.Linear default bias init: U(-1/sqrt(in_dim), 1/sqrt(in_dim))
            bound = 1.0 / math.sqrt(in_dim)
            self.bias = jax.random.uniform(
                bk, (out_dim,), minval=-bound, maxval=bound, dtype=jnp.float32
            )
        else:
            self.bias = None

    def __call__(self, x):
        # x: (..., in_dim)
        lead = x.shape[:-1]
        M = int(math.prod(lead)) if lead else 1
        x2d = x.reshape(M, self.in_dim)
        y2d = linear_projection_matmul(
            x2d, self.w_t, self.bias,
            compute_dtype=self.compute_dtype, tk_max=self._tk_max)
        return y2d.reshape(*lead, self.out_dim)


# ---------------------------------------------------------------------------
# smoke tests (small, fast)
# ---------------------------------------------------------------------------
if __name__ == "__main__":
    key = jax.random.PRNGKey(0)
    k_in, k_m1, k_in2, k_m2, k_m3, k_in4, k_m4 = jax.random.split(key, 7)

    def ref_matmul(x, proj):
        w = proj.w_t.astype(jnp.float32)
        y = x.reshape(-1, proj.in_dim).astype(jnp.float32) @ w
        if proj.bias is not None:
            y = y + proj.bias
        return y.reshape(*x.shape[:-1], proj.out_dim)

    # --- case 1: default bf16 compute, no bias, single-k path ----------------
    batch, seq, hidden, out_dim = 2, 8, 128, 256
    x = jax.random.normal(k_in, (batch, seq, hidden), dtype=jnp.float32)
    proj1 = LinearProjection(in_dim=hidden, out_dim=out_dim, key=k_m1)
    y1 = jax.block_until_ready(proj1(x))
    assert y1.shape == (batch, seq, out_dim) and y1.dtype == jnp.float32
    assert jnp.allclose(y1, ref_matmul(x, proj1), atol=2e-2, rtol=2e-2)

    # --- case 2: ragged M (partial edge block, no host pad) + bias -----------
    batch2, seq2 = 2, 5   # M = 10, not sublane aligned
    x2 = jax.random.normal(k_in2, (batch2, seq2, hidden), dtype=jnp.float32)
    proj2 = LinearProjection(in_dim=hidden, out_dim=hidden,
                             projection_layers_use_bias=True, key=k_m2)
    y2 = jax.block_until_ready(proj2(x2))
    assert y2.shape == (batch2, seq2, hidden)
    assert jnp.allclose(y2, ref_matmul(x2, proj2), atol=2e-2, rtol=2e-2)

    # --- case 3: explicit f32 compute, split-K, accumulate into o_ref --------
    hidden3 = 256
    x3 = jax.random.normal(k_in, (batch, seq, hidden3), dtype=jnp.float32)
    proj3 = LinearProjection(in_dim=hidden3, out_dim=hidden3, key=k_m3,
                             compute_dtype=jnp.float32, tk_max=128)
    y3 = jax.block_until_ready(proj3(x3))
    assert y3.shape == (batch, seq, hidden3)
    assert jnp.allclose(y3, ref_matmul(x3, proj3), atol=2e-2, rtol=2e-2)

    # --- case 4: bf16 input/output, split-K with f32 scratch accumulator -----
    x4 = jax.random.normal(k_in4, (batch, seq, hidden3), dtype=jnp.bfloat16)
    proj4 = LinearProjection(in_dim=hidden3, out_dim=128, key=k_m4, tk_max=128)
    y4 = jax.block_until_ready(proj4(x4))
    assert y4.shape == (batch, seq, 128) and y4.dtype == jnp.bfloat16
    assert jnp.allclose(y4.astype(jnp.float32), ref_matmul(x4, proj4),
                        atol=4e-2, rtol=4e-2)

    print("KERNEL_OK")
</pallas_src>

<mosaic_0001>
module attributes {stable_mosaic.version = 11 : i64} {
  func.func @_linear_kernel(%arg0: i32, %arg1: i32, %arg2: memref<16x128xbf16, #tpu.memory_space<vmem>>, %arg3: memref<128x256xbf16, #tpu.memory_space<vmem>>, %arg4: memref<16x256xf32, #tpu.memory_space<vmem>>) attributes {dimension_semantics = [#tpu.dimension_semantics<parallel>, #tpu.dimension_semantics<parallel>], iteration_bounds = array<i64: 1, 1>, scalar_prefetch = 0 : i64, scratch_operands = 0 : i64, tpu.core_type = #tpu.core_type<tc>, window_params = [{transform_indices = @transform_0, window_bounds = array<i64: 16, 128>}, {transform_indices = @transform_1, window_bounds = array<i64: 128, 256>}, {transform_indices = @transform_2, window_bounds = array<i64: 16, 256>}]} {
    %c0 = arith.constant 0 : index
    %c0_0 = arith.constant 0 : index
    %0 = vector.load %arg2[%c0, %c0_0] : memref<16x128xbf16, #tpu.memory_space<vmem>>, vector<16x128xbf16>
    %c0_1 = arith.constant 0 : index
    %c0_2 = arith.constant 0 : index
    %1 = vector.load %arg3[%c0_1, %c0_2] : memref<128x256xbf16, #tpu.memory_space<vmem>>, vector<128x256xbf16>
    %cst = arith.constant dense<0.000000e+00> : vector<16x256xf32>
    %2 = tpu.matmul %0, %1, %cst {dimension_numbers = #tpu.dot_dimension_numbers<[1], [0], [0], [1], [0, 0, 1, 1], [], []>} : vector<16x128xbf16>, vector<128x256xbf16>, vector<16x256xf32> -> vector<16x256xf32>
    %c0_3 = arith.constant 0 : index
    %c0_4 = arith.constant 0 : index
    %3 = vector.load %arg4[%c0_3, %c0_4] : memref<16x256xf32, #tpu.memory_space<vmem>>, vector<16x256xf32>
    tpu.vector_store %arg4[%c0_3, %c0_4], %2 {strides = array<i32>} : memref<16x256xf32, #tpu.memory_space<vmem>>, vector<16x256xf32>,
    return
  }
  func.func @transform_0(%arg0: i32, %arg1: i32) -> (i32, i32) {
    %c0_i32 = arith.constant 0 : i32
    %c0_i32_0 = arith.constant 0 : i32
    return %arg0, %c0_i32 : i32, i32
  }
  func.func @transform_1(%arg0: i32, %arg1: i32) -> (i32, i32) {
    %c0_i32 = arith.constant 0 : i32
    %c0_i32_0 = arith.constant 0 : i32
    return %c0_i32, %arg1 : i32, i32
  }
  func.func @transform_2(%arg0: i32, %arg1: i32) -> (i32, i32) {
    %c0_i32 = arith.constant 0 : i32
    return %arg0, %arg1 : i32, i32
  }
}

</mosaic_0001>

<bundles_post_ra>
// kernel: tpu_custom_call.1
= control target key start
LH: loop header
LB: loop body
LE: loop exit
PB: predicated region body
PF: predicated region fallthrough
CT: control target
= control target key end

     0   :  { %7 = vsyncpa [#allocation3], 0  ;;  %s395_s0 = inlined_call_operand.hbm [shape: bf16[16,128], index: 0, kind: input, shape index: {}]   ;;  %s396_s1 = inlined_call_operand.hbm [shape: bf16[128,256], index: 1, kind: input, shape index: {}]   ;;  %s397_s2 = inlined_call_operand.hbm [shape: f32[16,256], index: 2, kind: output, shape index: {}]  }
   0x1   :  { %8 = vsyncpa [#allocation6], 0 }
   0x2   :  { %9 = vsyncpa [#allocation4], 0  ;;  %s334_s9 = smov [#allocation2]   ;;  %s262_s13 = scalar_lea.hbm %s395_s0, 128 }
   0x3   :  { %s15_s10 = sshll.u32 %s334_s9, 4  ;;  %p263_p0 = scmp.ne.s32.totalorder %s395_s0, %s262_s13  ;;  %s16_s10 = int_to_ptr.vmem [resolvable:$true] %s15_s10 }
   0x4   :  { %p266_p1 = scmp.lt.u32.totalorder %s262_s13, %s395_s0 }
   0x6   :  { %p268_p2 = pnand %p266_p1, %p263_p0 }
   0x8   :  { %271 = shalt.err (!%p268_p2)
}
   0x9   :  { %s272_s18 = scalar_lea.vmem %s16_s10, 128  ;;  %p277_p4 = scmp.lt.s32.totalorder %s16_s10, %s16_s10 }
   0xa   :  { %p273_p3 = scmp.ne.s32.totalorder %s16_s10, %s272_s18  ;;  %p278_p5 = scmp.lt.s32.totalorder %s272_s18, %s272_s18 }
   0xc   :  { %p279_p6 = por %p278_p5, %p277_p4 }
   0xe   :  { %p280_p7 = pnand %p279_p6, %p273_p3 }
  0x10   :  { %283 = shalt.err (!%p280_p7)
}
  0x11   :  { %s335_s19 = smov 64   ;;  %s336_s20 = smov 4  }
  0x12   :  { %21 = dma.hbm_to_vmem [thread:$0]  %s395_s0, 128, %s16_s10, [#allocation3], %s335_s19, %s335_s19, %s336_s20  }
  0x13   :  { %s337_s23 = smov [#allocation5]   ;;  %s284_s27 = scalar_lea.hbm %s396_s1, 2048 }
  0x14   :  { %s27_s24 = sshll.u32 %s337_s23, 4  ;;  %p285_p8 = scmp.ne.s32.totalorder %s396_s1, %s284_s27  ;;  %s28_s24 = int_to_ptr.vmem [resolvable:$true] %s27_s24 }
  0x15   :  { %p288_p9 = scmp.lt.u32.totalorder %s284_s27, %s396_s1 }
  0x17   :  { %p290_p10 = pnand %p288_p9, %p285_p8 }
  0x19   :  { %293 = shalt.err (!%p290_p10)
}
  0x1a   :  { %s294_s4 = scalar_lea.vmem %s28_s24, 2048  ;;  %p299_p12 = scmp.lt.s32.totalorder %s28_s24, %s28_s24 }
  0x1b   :  { %p295_p11 = scmp.ne.s32.totalorder %s28_s24, %s294_s4  ;;  %p300_p13 = scmp.lt.s32.totalorder %s294_s4, %s294_s4 }
  0x1d   :  { %p301_p0 = por %p300_p13, %p299_p12 }
  0x1f   :  { %p302_p1 = pnand %p301_p0, %p295_p11 }
  0x21   :  { %305 = shalt.err (!%p302_p1)
}
  0x22   :  { %s338_s0 = smov 128   ;;  %s339_s5 = smov 8  }
  0x23   :  { %33 = dma.hbm_to_vmem [thread:$0]  %s396_s1, 2048, %s28_s24, [#allocation6], %s338_s0, %s338_s0, %s339_s5  }
  0x24   :  { %328 = dma.done.wait [#allocation3], 128  }
  0x25   :  { %329 = vsyncadd [#allocation3], 4294967168 }
  0x26   :  { %330 = dma.done.wait [#allocation6], 2048  }
  0x27   :  { %331 = vsyncadd [#allocation6], 4294965248  ;;  %v340_v0 = vmov 0   ;;  %v237_v1 = vld [vmem:[#allocation5 + $0x4] ss:$8 sps:$4 sm:$0xff]   ;;  %v261_v17 = vld [vmem:[#allocation2] sm:$0xff]  }
  0x28   :  { %177 = vmatprep.mubr.bf16.mxu0 %v340_v0  ;;  %v239_v2 = vld [vmem:[#allocation5] ss:$8 sps:$4 sm:$0xff]   ;;  %145 = vmatprep.subr.bf16.mxu0 %v237_v1  ;;  %v240_v3 = vld [vmem:[#allocation5 + $0x14] ss:$8 sps:$4 sm:$0xff]   ;;  %v242_v4 = vld [vmem:[#allocation5 + $0x10] ss:$8 sps:$4 sm:$0xff]  }
  0x29   :  { %146 = vmatpush1.bf16.msra.mxu0 %v239_v2  ;;  %v243_v5 = vld [vmem:[#allocation5 + $0x24] ss:$8 sps:$4 sm:$0xff]   ;;  %v245_v6 = vld [vmem:[#allocation5 + $0x20] ss:$8 sps:$4 sm:$0xff]   ;;  %v246_v7 = vld [vmem:[#allocation5 + $0x34] ss:$8 sps:$4 sm:$0xff]  }
  0x2a   :  { %147 = vmatprep.subr.bf16.mxu0 %v240_v3  ;;  %v248_v8 = vld [vmem:[#allocation5 + $0x30] ss:$8 sps:$4 sm:$0xff]   ;;  %v249_v9 = vld [vmem:[#allocation5 + $0x44] ss:$8 sps:$4 sm:$0xff]   ;;  %v251_v10 = vld [vmem:[#allocation5 + $0x40] ss:$8 sps:$4 sm:$0xff]  }
  0x2b   :  { %v252_v11 = vld [vmem:[#allocation5 + $0x54] ss:$8 sps:$4 sm:$0xff]   ;;  %v254_v12 = vld [vmem:[#allocation5 + $0x50] ss:$8 sps:$4 sm:$0xff]   ;;  %v255_v13 = vld [vmem:[#allocation5 + $0x64] ss:$8 sps:$4 sm:$0xff]  }
  0x2c   :  { %v257_v14 = vld [vmem:[#allocation5 + $0x60] ss:$8 sps:$4 sm:$0xff]   ;;  %v258_v15 = vld [vmem:[#allocation5 + $0x74] ss:$8 sps:$4 sm:$0xff]   ;;  %v260_v16 = vld [vmem:[#allocation5 + $0x70] ss:$8 sps:$4 sm:$0xff]  }
  0x2d   :  { %148 = vmatpush1.bf16.msra.mxu0 %v242_v4  ;;  %s341_s1 = smov [#allocation7]  }
  0x2e   :  { %149 = vmatprep.subr.bf16.mxu0 %v243_v5  ;;  %s197_s8 = sshll.u32 %s341_s1, 4  ;;  %s198_s8 = int_to_ptr.vmem [resolvable:$true] %s197_s8 }
  0x2f   :  { %s306_s9 = scalar_lea.vmem %s198_s8, 512  ;;  %p311_p3 = scmp.lt.s32.totalorder %s198_s8, %s198_s8 }
  0x30   :  { %p307_p2 = scmp.ne.s32.totalorder %s198_s8, %s306_s9  ;;  %p312_p4 = scmp.lt.s32.totalorder %s306_s9, %s306_s9 }
  0x31   :  { %150 = vmatpush1.bf16.msra.mxu0 %v245_v6 }
  0x32   :  { %151 = vmatprep.subr.bf16.mxu0 %v246_v7  ;;  %p313_p5 = por %p312_p4, %p311_p3 }
  0x34   :  { %p314_p6 = pnand %p313_p5, %p307_p2 }
  0x35   :  { %152 = vmatpush1.bf16.msra.mxu0 %v248_v8 }
  0x36   :  { %153 = vmatprep.subr.bf16.mxu0 %v249_v9 }
  0x39   :  { %154 = vmatpush1.bf16.msra.mxu0 %v251_v10 }
  0x3a   :  { %155 = vmatprep.subr.bf16.mxu0 %v252_v11 }
  0x3d   :  { %156 = vmatpush1.bf16.msra.mxu0 %v254_v12 }
  0x3e   :  { %157 = vmatprep.subr.bf16.mxu0 %v255_v13 }
  0x41   :  { %158 = vmatpush1.bf16.msra.mxu0 %v257_v14 }
  0x42   :  { %159 = vmatprep.subr.bf16.mxu0 %v258_v15 }
  0x45   :  { %160 = vmatpush1.bf16.msra.mxu0 %v260_v16 }
  0x48   :  { %178 = vmatmul.mubr.bf16.vlgmr.msra.gmra.mrb[0].mxu0 %v261_v17 }
 0x11b   :  { %v179_v18 = vpop.f32.mrb[0].mxu0 }
 0x11c   :  { %188 = vst [vmem:[#allocation7] sm:$0xff] %v179_v18  ;;  %v181_v19 = vpop.f32.mrb[1].mxu0 }
 0x11d   :  { %189 = vst [vmem:[#allocation7 + $0x8] sm:$0xff] %v181_v19  ;;  %v183_v20 = vpop.f32.mrb[2].mxu0 }
 0x11e   :  { %190 = vst [vmem:[#allocation7 + $0x10] sm:$0xff] %v183_v20  ;;  %v185_v21 = vpop.f32.mrb[3].mxu0 }
 0x11f   :  { %191 = vst [vmem:[#allocation7 + $0x18] sm:$0xff] %v185_v21 }
 0x120   :  { %317 = shalt.err (!%p314_p6)
}
 0x121   :  { %s318_s12 = scalar_lea.hbm %s397_s2, 512 }
 0x122   :  { %p319_p7 = scmp.ne.s32.totalorder %s397_s2, %s318_s12  ;;  %p322_p8 = scmp.lt.u32.totalorder %s318_s12, %s397_s2 }
 0x124   :  { %p324_p9 = pnand %p322_p8, %p319_p7 }
 0x126   :  { %327 = shalt.err (!%p324_p9)
}
 0x127   :  { %s342_s17 = smov 256   ;;  %s343_s18 = smov 16  }
 0x128   :  { %203 = dma.vmem_to_hbm [thread:$0]  %s198_s8, 512, %s397_s2, [#allocation4], %s342_s17, %s342_s17, %s343_s18  }
 0x129   :  { %332 = dma.done.wait [#allocation4], 512  }
 0x12a   :  { %333 = vsyncadd [#allocation4], 4294966784 }
 0x12b   :  { %207 = vsyncpa [#allocation3], 1 }
 0x12c   :  { %208 = vsyncpa [#allocation6], 1 }
 0x12d   :  { %209 = vsyncpa [#allocation4], 1 }

</bundles_post_ra>
